<compile_context>
chip_gen: v6e
topology: v6e:2x2x1
jax: 0.10.0
libtpu: 0.0.40
codegen_flags: <defaults>
</compile_context>

<pallas_src>
import functools
import math

import numpy as np
import jax
import jax.numpy as jnp
from jax.experimental import pallas as pl
from jax.experimental.pallas import tpu as pltpu

_BN_EPS = 1e-5


def _round_up(x, m):
    return (x + m - 1) // m * m


# ---------------------------------------------------------------------------
# pltpu.roll direction probe: pins the lane-shift sign convention empirically so
# the 3x3 tap shifts are unambiguous on every TPU generation / JAX version.
# ---------------------------------------------------------------------------
def _roll_probe_kernel(x_ref, o_ref):
    o_ref[...] = pltpu.roll(x_ref[...], 1, 1)


@functools.lru_cache(maxsize=None)
def _roll_shift_sign():
    """Returns s such that pltpu.roll(v, (s*off) % M, 1)[:, m] == v[:, (m+off) % M]."""
    x = jnp.broadcast_to(jnp.arange(128, dtype=jnp.float32), (8, 128))
    r = pl.pallas_call(
        _roll_probe_kernel,
        out_shape=jax.ShapeDtypeStruct((8, 128), jnp.float32),
    )(x)
    return -1 if int(r[0, 0]) == 127 else 1


# ---------------------------------------------------------------------------
# In-kernel building blocks (activations are (C, M): channels x flat pixels)
# ---------------------------------------------------------------------------
def _bn_relu(x, gamma, beta, inv_m):
    """Training-mode BatchNorm2d (batch stats computed in-kernel) + ReLU."""
    mean = jnp.sum(x, axis=1, keepdims=True) * inv_m
    var = jnp.maximum(jnp.sum(x * x, axis=1, keepdims=True) * inv_m - mean * mean, 0.0)
    scale = gamma * jax.lax.rsqrt(var + _BN_EPS)
    return jnp.maximum(x * scale + (beta - mean * scale), 0.0)


def _shift_cols(v, off, roll_sign):
    """result[:, m] = v[:, (m + off) % M]; wrap-around columns are masked by caller."""
    if off == 0:
        return v
    m = v.shape[1]
    return pltpu.roll(v, (roll_sign * off) % m, 1)


# ---------------------------------------------------------------------------
# The single fused kernel: stem conv -> 3 dense stages (blocks + transition+pool)
# -> final BN/ReLU/global-pool/fc/log_softmax.
# ---------------------------------------------------------------------------
def _densenet_kernel(*args, stages, stem_cout, roll_sign):
    # stages: tuple of (img_w, m_real, m_pad, c_start, n_blocks, growth, trans_out)
    n_stages = len(stages)
    n_scratch = n_stages + 1                       # one slab per stage + 3x3 tap buffer
    n_inputs = len(args) - 1 - n_scratch
    in_refs = args[:n_inputs]
    out_ref = args[n_inputs]
    slab_refs = args[n_inputs + 1:n_inputs + 1 + n_stages]
    ybuf_ref = args[n_inputs + 1 + n_stages]

    it = iter(in_refs)
    nxt = lambda: next(it)                         # noqa: E731

    x_ref = nxt()
    conv1_w_ref = nxt()
    masks_refs = [nxt() for _ in range(n_stages)]
    pool_refs = [nxt() for _ in range(n_stages - 1)]
    pool_final_ref = nxt()
    fc_w_ref = nxt()
    fc_b_ref = nxt()
    bnf_g_ref = nxt()
    bnf_b_ref = nxt()

    # ---- stem: raw 3x3 'same' conv (Cin is tiny -> broadcast FMAs on the VPU) ----
    img_w0, _, m_pad0, _, _, _, _ = stages[0]
    masks0 = masks_refs[0]
    cin = x_ref.shape[0]
    x = x_ref[...]
    acc = jnp.zeros((stem_cout, m_pad0), jnp.float32)
    for t in range(9):
        dy, dx = t // 3 - 1, t % 3 - 1
        # mask applied to the 1-row shifted input (hoisted out of the Cin loop)
        xs = _shift_cols(x, dy * img_w0 + dx, roll_sign) * masks0[t:t + 1, :]
        wt = conv1_w_ref[t]                        # (Cout, Cin)
        for ci in range(cin):
            acc = acc + wt[:, ci:ci + 1] * xs[ci:ci + 1, :]
    slab_refs[0][0:stem_cout, :] = acc

    # ---- dense stages (fully unrolled) ----
    for s in range(n_stages):
        img_w, m_real, m_pad, c_start, n_blocks, growth, trans_out = stages[s]
        slab = slab_refs[s]
        masks = masks_refs[s]
        inv_m = 1.0 / float(m_real)
        valid = masks[4:5, :]                      # centre tap == real-pixel mask

        c = c_start
        for _ in range(n_blocks):
            g1 = nxt(); b1 = nxt(); w1 = nxt()     # noqa: E702
            g2 = nxt(); b2 = nxt(); w2s = nxt()    # noqa: E702

            xin = slab[0:c, :]                     # growing prefix == torch.cat state
            # conv1(relu(bn1(x)))  (1x1 conv on the MXU)
            h1 = _bn_relu(xin, g1[...], b1[...], inv_m) * valid
            t1 = jnp.dot(w1[...], h1, preferred_element_type=jnp.float32)
            # conv2(relu(bn2(.)))  (3x3 'same' conv)
            h2 = _bn_relu(t1, g2[...], b2[...], inv_m) * valid
            # one row-stacked matmul for all 9 taps, result parked in VMEM scratch
            ybuf_ref[:, 0:m_pad] = jnp.dot(w2s[...], h2,
                                           preferred_element_type=jnp.float32)
            new = jnp.zeros((growth, m_pad), jnp.float32)
            for t in range(9):
                dy, dx = t // 3 - 1, t % 3 - 1
                y_t = ybuf_ref[t * growth:(t + 1) * growth, 0:m_pad]
                new = new + (_shift_cols(y_t, dy * img_w + dx, roll_sign)
                             * masks[t:t + 1, :])
            # DenseNet concat: write only the new rows; the prefix stays in place.
            slab[c:c + growth, :] = new
            c += growth

        if trans_out:
            # Transition: BN + ReLU + 1x1 conv, fused with the 2x2 average pool
            # (pool expressed as a matmul with a precomputed pooling matrix).
            tg = nxt(); tb = nxt(); tw = nxt()     # noqa: E702
            h = _bn_relu(slab[0:c, :], tg[...], tb[...], inv_m)
            tr = jnp.dot(tw[...], h, preferred_element_type=jnp.float32)
            slab_refs[s + 1][0:trans_out, :] = jnp.dot(
                tr, pool_refs[s][...], preferred_element_type=jnp.float32)
        else:
            # Final head: BN + ReLU + global avg pool + fc + log_softmax(dim=0)
            act = _bn_relu(slab[0:c, :], bnf_g_ref[...], bnf_b_ref[...], inv_m)
            pooled = jnp.dot(act, pool_final_ref[...],
                             preferred_element_type=jnp.float32)            # (C, N)
            logits = jnp.dot(fc_w_ref[...], pooled,
                             preferred_element_type=jnp.float32) + fc_b_ref[...]  # (K, N)
            # PyTorch quirk: log_softmax over dim=0 of (N, K) == over the batch axis,
            # which is axis=1 in this (K, N) orientation.
            mmax = jnp.max(logits, axis=1, keepdims=True)
            lse = mmax + jnp.log(jnp.sum(jnp.exp(logits - mmax), axis=1, keepdims=True))
            out_ref[...] = logits - lse


# ---------------------------------------------------------------------------
# Host-side (static) constants
# ---------------------------------------------------------------------------
def _tap_masks(n, h, w, m_pad):
    """(9, M) validity masks for the 3x3 taps (zero padding + padded-column kill)."""
    m_real = n * h * w
    idx = np.arange(m_real)
    hh = (idx // w) % h
    ww = idx % w
    masks = np.zeros((9, m_pad), np.float32)
    for t in range(9):
        dy, dx = t // 3 - 1, t % 3 - 1
        ok = (hh + dy >= 0) & (hh + dy < h) & (ww + dx >= 0) & (ww + dx < w)
        masks[t, :m_real] = ok.astype(np.float32)
    return jnp.asarray(masks)


def _pool2_matrix(n, h, w, m_pad_in, m_pad_out):
    """(M_in, M_out) matrix implementing the 2x2 average pool on the flat layout."""
    h2, w2 = h // 2, w // 2
    p = np.zeros((m_pad_in, m_pad_out), np.float32)
    dst = np.arange(n * h2 * w2)
    b = dst // (h2 * w2)
    i = (dst // w2) % h2
    j = dst % w2
    for di in range(2):
        for dj in range(2):
            src = b * (h * w) + (2 * i + di) * w + (2 * j + dj)
            p[src, dst] = 0.25
    return jnp.asarray(p)


def _global_pool_matrix(n, h, w, m_pad):
    """(M, N) matrix averaging each image's h*w real pixels (global avg pool)."""
    m_img = h * w
    p = np.zeros((m_pad, n), np.float32)
    for i in range(n):
        p[i * m_img:(i + 1) * m_img, i] = 1.0 / m_img
    return jnp.asarray(p)


# ---------------------------------------------------------------------------
# DenseNet forward (functional): one pallas_call for the whole network
# ---------------------------------------------------------------------------
def densenet_fwd(params, x_nchw):
    roll_sign = _roll_shift_sign()
    x = x_nchw.astype(jnp.float32)
    n, cin, h, w = x.shape

    growth = params["dense1"][0]["w2"].shape[1]
    dense_keys = ("dense1", "dense2", "dense3")
    trans_keys = ("trans1", "trans2", None)

    stem_cout = params["conv1_w"].shape[1]
    c_starts = [stem_cout,
                params["trans1"]["w"].shape[0],
                params["trans2"]["w"].shape[0]]
    hs = [h, h // 2, h // 4]
    ws = [w, w // 2, w // 4]
    m_reals = [n * hs[s] * ws[s] for s in range(3)]
    m_pads = [_round_up(m, 128) for m in m_reals]

    # NCHW -> (C, N*H*W) channels-first flat layout, lane-padded with zeros.
    xf = jnp.pad(jnp.transpose(x, (1, 0, 2, 3)).reshape(cin, m_reals[0]),
                 ((0, 0), (0, m_pads[0] - m_reals[0])))

    masks = [_tap_masks(n, hs[s], ws[s], m_pads[s]) for s in range(3)]
    pools = [_pool2_matrix(n, hs[s], ws[s], m_pads[s], m_pads[s + 1]) for s in range(2)]
    pool_final = _global_pool_matrix(n, hs[2], ws[2], m_pads[2])

    n_classes = params["fc_w"].shape[0]

    inputs = [xf, params["conv1_w"]]
    inputs += masks
    inputs += pools
    inputs += [pool_final, params["fc_w"], params["fc_b"].reshape(-1, 1),
               params["bn_final_g"], params["bn_final_b"]]

    stages = []
    c_ends = []
    for s in range(3):
        blocks = params[dense_keys[s]]
        for blk in blocks:
            inter = blk["w1"].shape[0]
            inputs += [blk["bn1_g"], blk["bn1_b"], blk["w1"],
                       blk["bn2_g"], blk["bn2_b"],
                       blk["w2"].reshape(9 * growth, inter)]   # (9*growth, inter)
        if trans_keys[s] is not None:
            tp = params[trans_keys[s]]
            inputs += [tp["g"], tp["b"], tp["w"]]
            trans_out = tp["w"].shape[0]
        else:
            trans_out = 0
        c_ends.append(c_starts[s] + len(blocks) * growth)
        stages.append((ws[s], m_reals[s], m_pads[s], c_starts[s],
                       len(blocks), growth, trans_out))

    kernel = functools.partial(_densenet_kernel, stages=tuple(stages),
                               stem_cout=stem_cout, roll_sign=roll_sign)

    out = pl.pallas_call(
        kernel,
        out_shape=jax.ShapeDtypeStruct((n_classes, n), jnp.float32),
        scratch_shapes=(
            [pltpu.VMEM((c_ends[s], m_pads[s]), jnp.float32) for s in range(3)]
            + [pltpu.VMEM((9 * growth, max(m_pads)), jnp.float32)]),
        compiler_params=pltpu.CompilerParams(vmem_limit_bytes=32 * 1024 * 1024),
    )(*inputs)

    # (nClasses, N) -> (N, nClasses); log_softmax over the batch dim already applied.
    return out.T


# ---------------------------------------------------------------------------
# Deterministic parameter init (matches the PyTorch __init__ shapes/init rules)
# ---------------------------------------------------------------------------
def init_params(key, *, growth_rate=8, depth=16, compression=0.5, n_classes=10, in_ch=1):
    n_dense = ((depth - 4) // 3) // 2          # bottleneck=True
    n_channels = 2 * growth_rate
    keys = iter(jax.random.split(key, 128))

    def conv_w(cout, cin, k):
        n_fan = k * k * cout
        std = math.sqrt(2.0 / n_fan)
        wt = jax.random.normal(next(keys), (cout, cin, k, k), jnp.float32) * std
        if k == 1:
            return wt[:, :, 0, 0]                                         # (Cout, Cin)
        return jnp.transpose(wt, (2, 3, 0, 1)).reshape(k * k, cout, cin)  # (9, Cout, Cin)

    def bn(c):
        return jnp.ones((c, 1), jnp.float32), jnp.zeros((c, 1), jnp.float32)

    params = {"conv1_w": conv_w(n_channels, in_ch, 3)}

    def make_dense(nc):
        blocks = []
        for _ in range(n_dense):
            inter = 4 * growth_rate
            g1, b1 = bn(nc)
            g2, b2 = bn(inter)
            blocks.append({
                "bn1_g": g1, "bn1_b": b1, "w1": conv_w(inter, nc, 1),
                "bn2_g": g2, "bn2_b": b2, "w2": conv_w(growth_rate, inter, 3),
            })
            nc += growth_rate
        return blocks, nc

    params["dense1"], n_channels = make_dense(n_channels)
    n_out = int(math.floor(n_channels * compression))
    g, b = bn(n_channels)
    params["trans1"] = {"g": g, "b": b, "w": conv_w(n_out, n_channels, 1)}
    n_channels = n_out

    params["dense2"], n_channels = make_dense(n_channels)
    n_out = int(math.floor(n_channels * compression))
    g, b = bn(n_channels)
    params["trans2"] = {"g": g, "b": b, "w": conv_w(n_out, n_channels, 1)}
    n_channels = n_out

    params["dense3"], n_channels = make_dense(n_channels)
    params["bn_final_g"], params["bn_final_b"] = bn(n_channels)

    bound = 1.0 / math.sqrt(n_channels)
    params["fc_w"] = jax.random.uniform(next(keys), (n_classes, n_channels),
                                        jnp.float32, -bound, bound)
    params["fc_b"] = jnp.zeros((n_classes,), jnp.float32)
    return params


if __name__ == "__main__":
    _roll_shift_sign()  # prime the roll-direction probe (one tiny eager kernel)

    key = jax.random.PRNGKey(0)
    pkey, xkey = jax.random.split(key)
    # Small DenseNet: growthRate=8, depth=16, bottleneck=True, data_type='mnist',
    # type='classification', nClasses=10.
    params = init_params(pkey, growth_rate=8, depth=16, compression=0.5,
                         n_classes=10, in_ch=1)
    x = jax.random.normal(xkey, (2, 1, 28, 28), jnp.float32)  # NCHW, as in PyTorch
    fwd = jax.jit(densenet_fwd)
    out = fwd(params, x)
    jax.block_until_ready(out)
    assert out.shape == (2, 10), out.shape
    print("KERNEL_OK")
</pallas_src>

<mosaic_0001>
module attributes {stable_mosaic.version = 11 : i64} {
  func.func @_roll_probe_kernel(%arg0: memref<8x128xf32, #tpu.memory_space<vmem>>, %arg1: memref<8x128xf32, #tpu.memory_space<vmem>>) attributes {dimension_semantics = [], scalar_prefetch = 0 : i64, scratch_operands = 0 : i64, tpu.core_type = #tpu.core_type<tc>} {
    %c0 = arith.constant 0 : index
    %c0_0 = arith.constant 0 : index
    %0 = vector.load %arg0[%c0, %c0_0] : memref<8x128xf32, #tpu.memory_space<vmem>>, vector<8x128xf32>
    %c1_i32 = arith.constant 1 : i32
    %1 = tpu.dynamic_rotate %0 by %c1_i32 dim 1 : vector<8x128xf32>, i32 -> vector<8x128xf32>
    %c0_1 = arith.constant 0 : index
    %c0_2 = arith.constant 0 : index
    %2 = vector.load %arg1[%c0_1, %c0_2] : memref<8x128xf32, #tpu.memory_space<vmem>>, vector<8x128xf32>
    tpu.vector_store %arg1[%c0_1, %c0_2], %1 {strides = array<i32>} : memref<8x128xf32, #tpu.memory_space<vmem>>, vector<8x128xf32>,
    return
  }
}

</mosaic_0001>

<bundles_post_ra>
// kernel: tpu_custom_call.1
= control target key start
LH: loop header
LB: loop body
LE: loop exit
PB: predicated region body
PF: predicated region fallthrough
CT: control target
= control target key end

     0   :  { %6 = vsyncpa [#allocation3], 0  ;;  %s106_s0 = inlined_call_operand.hbm [shape: f32[8,128], index: 0, kind: input, shape index: {}]   ;;  %s107_s1 = inlined_call_operand.hbm [shape: f32[8,128], index: 1, kind: output, shape index: {}]  }
   0x1   :  { %7 = vsyncpa [#allocation4], 0  ;;  %s87_s6 = smov [#allocation2]  }
   0x2   :  { %s14_s7 = sshll.u32 %s87_s6, 4  ;;  %s15_s7 = int_to_ptr.vmem [resolvable:$true] %s14_s7 }
   0x3   :  { %s51_s8 = scalar_lea.vmem %s15_s7, 128  ;;  %p56_p1 = scmp.lt.s32.totalorder %s15_s7, %s15_s7 }
   0x4   :  { %p52_p0 = scmp.ne.s32.totalorder %s15_s7, %s51_s8  ;;  %p57_p2 = scmp.lt.s32.totalorder %s51_s8, %s51_s8 }
   0x6   :  { %p58_p3 = por %p57_p2, %p56_p1 }
   0x8   :  { %p59_p4 = pnand %p58_p3, %p52_p0 }
   0xa   :  { %62 = shalt.err (!%p59_p4)
}
   0xb   :  { %17 = dma.hbm_to_vmem [thread:$0]  %s106_s0, 128, %s15_s7, [#allocation3]  }
   0xc   :  { %83 = dma.done.wait [#allocation3], 128  }
   0xd   :  { %84 = vsyncadd [#allocation3], 4294967168  ;;  %v21_v0 = vld [vmem:[#allocation2] sm:$0xff]  ;;  %s88_s11 = smov 1   ;;  %s89_s12 = smov [#allocation5]  }
   0xe   :  { %22 = vrot.lane.b32.xlu0 %v21_v0, %s88_s11  ;;  %s31_s13 = sshll.u32 %s89_s12, 4  ;;  %s32_s13 = int_to_ptr.vmem [resolvable:$true] %s31_s13 }
   0xf   :  { %s63_s14 = scalar_lea.vmem %s32_s13, 128  ;;  %p68_p6 = scmp.lt.s32.totalorder %s32_s13, %s32_s13 }
  0x10   :  { %p64_p5 = scmp.ne.s32.totalorder %s32_s13, %s63_s14  ;;  %p69_p7 = scmp.lt.s32.totalorder %s63_s14, %s63_s14 }
  0x12   :  { %p70_p8 = por %p69_p7, %p68_p6 }
  0x14   :  { %p71_p9 = pnand %p70_p8, %p64_p5 }
  0x80   :  { %v23_v1 = vpop.permute.xlu0 %22 }
  0x81   :  { %24 = vst [vmem:[#allocation5] sm:$0xff] %v23_v1 }
  0x82   :  { %74 = shalt.err (!%p71_p9)
}
  0x83   :  { %34 = dma.vmem_to_hbm [thread:$0]  %s32_s13, 128, %s107_s1, [#allocation4]  }
  0x84   :  { %85 = dma.done.wait [#allocation4], 128  }
  0x85   :  { %86 = vsyncadd [#allocation4], 4294967168 }
  0x86   :  { %38 = vsyncpa [#allocation3], 1 }
  0x87   :  { %39 = vsyncpa [#allocation4], 1 }

</bundles_post_ra>
